<compile_context>
chip_gen: v7x
topology: tpu7x:2x2x1
jax: 0.10.0
libtpu: 0.0.40
codegen_flags: <defaults>
</compile_context>

<pallas_src>
import jax
import jax.numpy as jnp
from jax.experimental import pallas as pl
from jax.experimental.pallas import tpu as pltpu


def _round_up(n, m):
    return ((n + m - 1) // m) * m


def _mlp_kernel(x_ref, w1_ref, b1_ref, w2_ref, b2_ref, w3_ref, b3_ref, o_ref):
    # x_ref: (TILE_B, KP) bf16; w*: bf16; b*: f32; o_ref: (1, TILE_B) f32.
    x = x_ref[...]

    h1 = jnp.dot(x, w1_ref[...], preferred_element_type=jnp.float32) + b1_ref[...]
    h1 = jnp.maximum(h1, 0.0).astype(jnp.bfloat16)   # relu(fc1); dropout = identity

    h2 = jnp.dot(h1, w2_ref[...], preferred_element_type=jnp.float32) + b2_ref[...]
    h2 = jnp.maximum(h2, 0.0).astype(jnp.bfloat16)   # relu(fc2); dropout = identity

    # fc3 as (1, 32) x (TILE_B, 32)^T -> (1, TILE_B): lane-dense epilogue + stores.
    logits = jax.lax.dot_general(
        w3_ref[...], h2, (((1,), (1,)), ((), ())),
        preferred_element_type=jnp.float32) + b3_ref[...]
    o_ref[...] = jax.nn.sigmoid(logits)              # sigmoid(fc3)


def rhyme_embedding_net(x, params, *, tile_b=1024):
    """x: (B, 2*embedding_dim) float -> (B, 1) float32 (eval/inference mode).

    Note: for tiny batches (B <~ a few hundred) the plain fused-XLA path is
    faster than paying pallas_call dispatch; in production dispatch on B. The
    kernel path is always used here so the Pallas code is exercised.
    """
    w1, b1, w2, b2, w3, b3 = params
    B, feat = x.shape
    h1_dim = w1.shape[1]            # 64
    h2_dim = w2.shape[1]            # 32

    kp = _round_up(feat, 64)                      # pad fc1 K: 50 -> 64
    tb = min(tile_b, _round_up(B, 128))           # lane-dense (128-mult) output tile
    bp = _round_up(B, tb)
    grid = (bp // tb,)

    # bf16 streaming operands (f32 accumulation in-kernel), zero-padded.
    xp = jnp.zeros((bp, kp), jnp.bfloat16).at[:B, :feat].set(x.astype(jnp.bfloat16))
    w1p = jnp.zeros((kp, h1_dim), jnp.bfloat16).at[:feat, :].set(w1.astype(jnp.bfloat16))
    w2b = w2.astype(jnp.bfloat16)
    w3r = w3.astype(jnp.bfloat16).reshape(1, h2_dim)       # (32, 1) -> (1, 32)
    b1f = b1.reshape(1, h1_dim).astype(jnp.float32)
    b2f = b2.reshape(1, h2_dim).astype(jnp.float32)
    b3f = b3.reshape(1, 1).astype(jnp.float32)

    weight_bytes = 2 * (kp * h1_dim + h1_dim * h2_dim + h2_dim) \
        + 4 * (h1_dim + h2_dim + 1)

    out_row = pl.pallas_call(
        _mlp_kernel,
        out_shape=jax.ShapeDtypeStruct((1, bp), jnp.float32),
        grid=grid,
        in_specs=[
            pl.BlockSpec((tb, kp), lambda i: (i, 0)),       # x: streamed per batch tile
            pl.BlockSpec((kp, h1_dim), lambda i: (0, 0)),   # weights/biases: VMEM-resident
            pl.BlockSpec((1, h1_dim), lambda i: (0, 0)),
            pl.BlockSpec((h1_dim, h2_dim), lambda i: (0, 0)),
            pl.BlockSpec((1, h2_dim), lambda i: (0, 0)),
            pl.BlockSpec((1, h2_dim), lambda i: (0, 0)),
            pl.BlockSpec((1, 1), lambda i: (0, 0)),
        ],
        out_specs=pl.BlockSpec((1, tb), lambda i: (0, i)),  # lane-dense output row
        compiler_params=pltpu.CompilerParams(
            dimension_semantics=("parallel",),              # v7x: shard batch over 2 TCs
            vmem_limit_bytes=8 << 20,
        ),
        cost_estimate=pl.CostEstimate(
            flops=2 * bp * (kp * h1_dim + h1_dim * h2_dim + h2_dim),
            transcendentals=bp,
            bytes_accessed=bp * kp * 2 + bp * 4 + weight_bytes,
        ),
    )(xp, w1p, b1f, w2b, b2f, w3r, b3f)

    return out_row[0, :B].reshape(B, 1)


def _reference(x, params):
    """Pure-JAX reference mirroring the kernel's bf16-in / f32-accum arithmetic."""
    w1, b1, w2, b2, w3, b3 = params
    xb = x.astype(jnp.bfloat16)
    h1 = jnp.maximum(
        jnp.dot(xb, w1.astype(jnp.bfloat16), preferred_element_type=jnp.float32)
        + b1.astype(jnp.float32), 0.0).astype(jnp.bfloat16)
    h2 = jnp.maximum(
        jnp.dot(h1, w2.astype(jnp.bfloat16), preferred_element_type=jnp.float32)
        + b2.astype(jnp.float32), 0.0).astype(jnp.bfloat16)
    logits = jnp.dot(h2, w3.astype(jnp.bfloat16),
                     preferred_element_type=jnp.float32) + b3.astype(jnp.float32)
    return jax.nn.sigmoid(logits)


def init_params(key, embedding_dim=25):
    """Deterministic init matching nn.Linear's U(-1/sqrt(fan_in), 1/sqrt(fan_in)).

    Weights stored as (in_features, out_features) so y = x @ W + b.
    """
    dims = [(embedding_dim * 2, 64), (64, 32), (32, 1)]
    params = []
    for (fan_in, fan_out) in dims:
        key, kw, kb = jax.random.split(key, 3)
        bound = 1.0 / jnp.sqrt(fan_in)
        w = jax.random.uniform(kw, (fan_in, fan_out), jnp.float32, -bound, bound)
        b = jax.random.uniform(kb, (1, fan_out), jnp.float32, -bound, bound)
        params += [w, b]
    return tuple(params)


if __name__ == "__main__":
    key = jax.random.PRNGKey(0)
    embedding_dim = 25
    batch = 8

    key_p, key_x = jax.random.split(key)
    params = init_params(key_p, embedding_dim)
    x = jax.random.normal(key_x, (batch, embedding_dim * 2), jnp.float32)

    out = jax.block_until_ready(rhyme_embedding_net(x, params))
    ref = _reference(x, params)

    assert out.shape == (batch, 1)
    assert jnp.allclose(out, ref, atol=1e-3), "mismatch vs reference"
    print("KERNEL_OK")
</pallas_src>

<mosaic_0001>
module attributes {stable_mosaic.version = 11 : i64} {
  func.func @_mlp_kernel(%arg0: i32, %arg1: memref<128x64xbf16, #tpu.memory_space<vmem>>, %arg2: memref<64x64xbf16, #tpu.memory_space<vmem>>, %arg3: memref<1x64xf32, #tpu.memory_space<vmem>>, %arg4: memref<64x32xbf16, #tpu.memory_space<vmem>>, %arg5: memref<1x32xf32, #tpu.memory_space<vmem>>, %arg6: memref<1x32xbf16, #tpu.memory_space<vmem>>, %arg7: memref<1x1xf32, #tpu.memory_space<vmem>>, %arg8: memref<1x128xf32, #tpu.memory_space<vmem>>) attributes {dimension_semantics = [#tpu.dimension_semantics<parallel>], iteration_bounds = array<i64: 1>, scalar_prefetch = 0 : i64, scratch_operands = 0 : i64, tpu.core_type = #tpu.core_type<tc>, window_params = [{transform_indices = @transform_0, window_bounds = array<i64: 128, 64>}, {pipeline_mode = #tpu.pipeline_mode<synchronous>, transform_indices = @transform_1, window_bounds = array<i64: 64, 64>}, {pipeline_mode = #tpu.pipeline_mode<synchronous>, transform_indices = @transform_2, window_bounds = array<i64: 1, 64>}, {pipeline_mode = #tpu.pipeline_mode<synchronous>, transform_indices = @transform_3, window_bounds = array<i64: 64, 32>}, {pipeline_mode = #tpu.pipeline_mode<synchronous>, transform_indices = @transform_4, window_bounds = array<i64: 1, 32>}, {pipeline_mode = #tpu.pipeline_mode<synchronous>, transform_indices = @transform_5, window_bounds = array<i64: 1, 32>}, {pipeline_mode = #tpu.pipeline_mode<synchronous>, transform_indices = @transform_6, window_bounds = array<i64: 1, 1>}, {transform_indices = @transform_7, window_bounds = array<i64: 1, 128>}]} {
    %c0 = arith.constant 0 : index
    %c0_0 = arith.constant 0 : index
    %0 = vector.load %arg1[%c0, %c0_0] : memref<128x64xbf16, #tpu.memory_space<vmem>>, vector<128x64xbf16>
    %c0_1 = arith.constant 0 : index
    %c0_2 = arith.constant 0 : index
    %1 = vector.load %arg2[%c0_1, %c0_2] : memref<64x64xbf16, #tpu.memory_space<vmem>>, vector<64x64xbf16>
    %cst = arith.constant dense<0.000000e+00> : vector<128x64xf32>
    %2 = tpu.matmul %0, %1, %cst {dimension_numbers = #tpu.dot_dimension_numbers<[1], [0], [0], [1], [0, 0, 1, 1], [], []>} : vector<128x64xbf16>, vector<64x64xbf16>, vector<128x64xf32> -> vector<128x64xf32>
    %c0_3 = arith.constant 0 : index
    %c0_4 = arith.constant 0 : index
    %3 = vector.load %arg3[%c0_3, %c0_4] : memref<1x64xf32, #tpu.memory_space<vmem>>, vector<1x64xf32>
    %4 = vector.broadcast %3 : vector<1x64xf32> to vector<128x64xf32>
    %5 = arith.addf %2, %4 : vector<128x64xf32>
    %cst_5 = arith.constant 0.000000e+00 : f32
    %6 = vector.broadcast %cst_5 : f32 to vector<128x64xf32>
    %7 = arith.maximumf %5, %6 : vector<128x64xf32>
    %8 = arith.truncf %7 : vector<128x64xf32> to vector<128x64xbf16>
    %c0_6 = arith.constant 0 : index
    %c0_7 = arith.constant 0 : index
    %9 = vector.load %arg4[%c0_6, %c0_7] : memref<64x32xbf16, #tpu.memory_space<vmem>>, vector<64x32xbf16>
    %cst_8 = arith.constant dense<0.000000e+00> : vector<128x32xf32>
    %10 = tpu.matmul %8, %9, %cst_8 {dimension_numbers = #tpu.dot_dimension_numbers<[1], [0], [0], [1], [0, 0, 1, 1], [], []>} : vector<128x64xbf16>, vector<64x32xbf16>, vector<128x32xf32> -> vector<128x32xf32>
    %c0_9 = arith.constant 0 : index
    %c0_10 = arith.constant 0 : index
    %11 = vector.load %arg5[%c0_9, %c0_10] : memref<1x32xf32, #tpu.memory_space<vmem>>, vector<1x32xf32>
    %12 = vector.broadcast %11 : vector<1x32xf32> to vector<128x32xf32>
    %13 = arith.addf %10, %12 : vector<128x32xf32>
    %cst_11 = arith.constant 0.000000e+00 : f32
    %14 = vector.broadcast %cst_11 : f32 to vector<128x32xf32>
    %15 = arith.maximumf %13, %14 : vector<128x32xf32>
    %16 = arith.truncf %15 : vector<128x32xf32> to vector<128x32xbf16>
    %c0_12 = arith.constant 0 : index
    %c0_13 = arith.constant 0 : index
    %17 = vector.load %arg6[%c0_12, %c0_13] : memref<1x32xbf16, #tpu.memory_space<vmem>>, vector<1x32xbf16>
    %cst_14 = arith.constant dense<0.000000e+00> : vector<1x128xf32>
    %18 = tpu.matmul %17, %16, %cst_14 {dimension_numbers = #tpu.dot_dimension_numbers<[1], [1], [0], [0], [0, 0, 1, 0], [], []>} : vector<1x32xbf16>, vector<128x32xbf16>, vector<1x128xf32> -> vector<1x128xf32>
    %c0_15 = arith.constant 0 : index
    %c0_16 = arith.constant 0 : index
    %19 = vector.load %arg7[%c0_15, %c0_16] : memref<1x1xf32, #tpu.memory_space<vmem>>, vector<1x1xf32>
    %20 = vector.broadcast %19 : vector<1x1xf32> to vector<1x128xf32>
    %21 = arith.addf %18, %20 : vector<1x128xf32>
    %22 = arith.negf %21 : vector<1x128xf32>
    %23 = math.exp %22 : vector<1x128xf32>
    %cst_17 = arith.constant 1.000000e+00 : f32
    %24 = vector.broadcast %cst_17 : f32 to vector<1x128xf32>
    %25 = arith.addf %24, %23 : vector<1x128xf32>
    %26 = arith.divf %24, %25 : vector<1x128xf32>
    %c0_18 = arith.constant 0 : index
    %c0_19 = arith.constant 0 : index
    %27 = vector.load %arg8[%c0_18, %c0_19] : memref<1x128xf32, #tpu.memory_space<vmem>>, vector<1x128xf32>
    tpu.vector_store %arg8[%c0_18, %c0_19], %26 {strides = array<i32>} : memref<1x128xf32, #tpu.memory_space<vmem>>, vector<1x128xf32>,
    return
  }
  func.func @transform_0(%arg0: i32) -> (i32, i32) {
    %c0_i32 = arith.constant 0 : i32
    %c0_i32_0 = arith.constant 0 : i32
    return %arg0, %c0_i32 : i32, i32
  }
  func.func @transform_1(%arg0: i32) -> (i32, i32) {
    %c0_i32 = arith.constant 0 : i32
    %c0_i32_0 = arith.constant 0 : i32
    %c0_i32_1 = arith.constant 0 : i32
    return %c0_i32, %c0_i32_0 : i32, i32
  }
  func.func @transform_2(%arg0: i32) -> (i32, i32) {
    %c0_i32 = arith.constant 0 : i32
    %c0_i32_0 = arith.constant 0 : i32
    %c0_i32_1 = arith.constant 0 : i32
    return %c0_i32, %c0_i32_0 : i32, i32
  }
  func.func @transform_3(%arg0: i32) -> (i32, i32) {
    %c0_i32 = arith.constant 0 : i32
    %c0_i32_0 = arith.constant 0 : i32
    %c0_i32_1 = arith.constant 0 : i32
    return %c0_i32, %c0_i32_0 : i32, i32
  }
  func.func @transform_4(%arg0: i32) -> (i32, i32) {
    %c0_i32 = arith.constant 0 : i32
    %c0_i32_0 = arith.constant 0 : i32
    %c0_i32_1 = arith.constant 0 : i32
    return %c0_i32, %c0_i32_0 : i32, i32
  }
  func.func @transform_5(%arg0: i32) -> (i32, i32) {
    %c0_i32 = arith.constant 0 : i32
    %c0_i32_0 = arith.constant 0 : i32
    %c0_i32_1 = arith.constant 0 : i32
    return %c0_i32, %c0_i32_0 : i32, i32
  }
  func.func @transform_6(%arg0: i32) -> (i32, i32) {
    %c0_i32 = arith.constant 0 : i32
    %c0_i32_0 = arith.constant 0 : i32
    %c0_i32_1 = arith.constant 0 : i32
    return %c0_i32, %c0_i32_0 : i32, i32
  }
  func.func @transform_7(%arg0: i32) -> (i32, i32) {
    %c0_i32 = arith.constant 0 : i32
    %c0_i32_0 = arith.constant 0 : i32
    return %c0_i32, %arg0 : i32, i32
  }
}

</mosaic_0001>

<bundles_post_ra>
// kernel: tpu_custom_call.1
= control target key start
LH: loop header
LB: loop body
LE: loop exit
PB: predicated region body
PF: predicated region fallthrough
CT: control target
= control target key end

     0   :  { %s891_s0 = inlined_call_operand.vmem [shape: bf16[128,64], index: 0, kind: input, shape index: {}]   ;;  %s892_s1 = inlined_call_operand.vmem [shape: bf16[64,64], index: 1, kind: input, shape index: {}]   ;;  %s893_s2 = inlined_call_operand.vmem [shape: f32[1,64], index: 2, kind: input, shape index: {}]   ;;  %s894_s3 = inlined_call_operand.vmem [shape: bf16[64,32], index: 3, kind: input, shape index: {}]   ;;  %s895_s4 = inlined_call_operand.vmem [shape: f32[1,32], index: 4, kind: input, shape index: {}]   ;;  %s896_s5 = inlined_call_operand.vmem [shape: bf16[1,32], index: 5, kind: input, shape index: {}]   ;;  %s897_s6 = inlined_call_operand.<no memory space> [shape: f32[1,1], index: 6, kind: input, shape index: {}]   ;;  %s898_s7 = inlined_call_operand.hbm [shape: f32[1,128], index: 7, kind: output, shape index: {}]  }
   0x1   :  { %v12_v0 = vstv %s897_s6 }
   0x2   :  { %13 = vst [vmem:[#allocation2] sm:$0x1] %v12_v0 }
   0x3   :  { %v697_v1 = vld [vmem:[%s892_s1] sm:$0xff]   ;;  %v698_v2 = vld [vmem:[%s892_s1 + $0x8] sm:$0xff]   ;;  %v699_v3 = vld [vmem:[%s892_s1 + $0x10] sm:$0xff]   ;;  %vm125_vm0 = vcmask 523264  }
   0x4   :  { %624 = vmatprep.subr.bf16.mxu1 %v697_v1  ;;  %v701_v4 = vld [vmem:[%s891_s0] sm:$0xff]   ;;  %v700_v5 = vld [vmem:[%s892_s1 + $0x18] sm:$0xff]   ;;  %v702_v7 = vld [vmem:[%s891_s0 + $0x8] sm:$0xff]  }
   0x5   :  { %625 = vmatpush3.bf16.msra.mxu1 %v697_v1  ;;  %632 = vmatprep.mubr.msk.bf16.mxu1 %vm125_vm0, %v701_v4  ;;  %v709_v6 = vld [vmem:[%s894_s3] sm:$0xff]   ;;  %v703_v8 = vld [vmem:[%s891_s0 + $0x10] sm:$0xff]  }
   0x6   :  { %626 = vmatprep.subr.bf16.mxu1 %v698_v2 }
   0x9   :  { %627 = vmatpush3.bf16.msra.mxu1 %v698_v2 }
   0xa   :  { %628 = vmatprep.subr.bf16.mxu1 %v699_v3 }
   0xd   :  { %629 = vmatpush3.bf16.msra.mxu1 %v699_v3 }
   0xe   :  { %630 = vmatprep.subr.bf16.mxu1 %v700_v5 }
  0x11   :  { %631 = vmatpush3.bf16.msra.mxu1 %v700_v5 }
  0x12   :  { %14 = vsyncpa [#allocation4], 0  ;;  %648 = vmatprep.subr.bf16.mxu1 %v709_v6  ;;  %v710_v9 = vld [vmem:[%s894_s3 + $0x8] sm:$0xff]   ;;  %v711_v10 = vld [vmem:[%s894_s3 + $0x10] sm:$0xff]   ;;  %vm742_vm1 = vmmov 0   ;;  %vm466_vm2 = vcmask 261120  }
  0x13   :  { %v704_v11 = vld [vmem:[%s891_s0 + $0x18] sm:$0xff]   ;;  %v705_v12 = vld [vmem:[%s891_s0 + $0x20] sm:$0xff]   ;;  %v706_v13 = vld [vmem:[%s891_s0 + $0x28] sm:$0xff]   ;;  %s744_s11 = smov [#allocation3]  }
  0x14   :  { %633 = vmatmul.mubr.msk.bf16.vlgmr.msra.gmra.mrb[0].mxu1 %vm125_vm0, %v702_v7  ;;  %v707_v14 = vld [vmem:[%s891_s0 + $0x30] sm:$0xff]   ;;  %v708_v15 = vld [vmem:[%s891_s0 + $0x38] sm:$0xff]   ;;  %v555_v17 = vld [vmem:[%s893_s2] ss:$0 sm:$0xff]  ;;  %s547_s12 = sshll.u32 %s744_s11, 4  ;;  %s548_s12 = int_to_ptr.vmem [resolvable:$true] %s547_s12 }
  0x15   :  { %636 = vmatprep.mubr.msk.bf16.mxu1 %vm125_vm0, %v703_v8  ;;  %649 = vmatpush3.bf16.msra.mxu1 %v709_v6  ;;  %v712_v16 = vld [vmem:[%s894_s3 + $0x18] sm:$0xff]   ;;  %s721_s13 = scalar_lea.vmem %s548_s12, 32  ;;  %p722_p1 = scmp.lt.s32.totalorder %s548_s12, %s548_s12 }
  0x16   :  { %650 = vmatprep.subr.bf16.mxu1 %v710_v9 }
  0x19   :  { %651 = vmatpush3.bf16.msra.mxu1 %v710_v9 }
  0x1a   :  { %652 = vmatprep.subr.bf16.mxu1 %v711_v10 }
  0x1c   :  { %637 = vmatmul.mubr.msk.bf16.gmra.mrb[4].mxu1 %vm125_vm0, %v704_v11  ;;  %v456_v11 = vld [vmem:[#allocation2] sm:$0x1] }
  0x1d   :  { %640 = vmatprep.mubr.msk.bf16.mxu1 %vm125_vm0, %v705_v12  ;;  %653 = vmatpush3.bf16.msra.mxu1 %v711_v10  ;;  %v741_v10 = vmov 0.0   ;;  %v743_v12 = vmov 0  }
  0x1e   :  { %654 = vmatprep.subr.bf16.mxu1 %v712_v16  ;;  %672 = vmatprep.subr.bf16.mxu0 %v741_v10 }
  0x1f   :  { %688 = vmatprep.mubr.msk.bf16.mxu0 %vm742_vm1, %v741_v10  ;;  %696 = vset.pattern.permute.xlu0 %v743_v12 }
  0x20   :  { %459 = vperm.xlu0 %696, %v456_v11  }
  0x21   :  { %655 = vmatpush3.bf16.msra.mxu1 %v712_v16 }
  0x24   :  { %641 = vmatmul.mubr.msk.bf16.gmra.mrb[8].mxu1 %vm125_vm0, %v706_v13  ;;  %v576_v13 = vld [vmem:[%s895_s4] ss:$0 sm:$0xff] }
  0x25   :  { %644 = vmatprep.mubr.msk.bf16.mxu1 %vm125_vm0, %v707_v14 }
  0x2c   :  { %645 = vmatmul.mubr.msk.bf16.gmra.mrb[12].mxu1 %vm125_vm0, %v708_v15 }
  0xe7   :  { %v634_v18 = vpop.f32.mrb[0].mxu1 }
  0xe8   :  { %v193_v19 = vadd.f32 %v634_v18, %v555_v17  ;;  %v184_v20 = vpop.f32.mrb[1].mxu1 }
  0xe9   :  { %v185_v21 = vadd.f32 %v555_v17, %v184_v20  ;;  %v635_v22 = vpop.f32.mrb[2].mxu1 }
  0xea   :  { %v196_v23 = vadd.f32 %v635_v22, %v555_v17  ;;  %v187_v24 = vpop.f32.mrb[3].mxu1  ;;  %v249_v26 = vmax.f32 %v193_v19, 0.0 }
  0xeb   :  { %v188_v25 = vadd.f32 %v555_v17, %v187_v24  ;;  %v247_v28 = vmax.f32 %v185_v21, 0.0 }
  0xec   :  { %v250_v27 = vmax.f32 %v196_v23, 0.0 }
  0xed   :  { %v248_v29 = vmax.f32 %v188_v25, 0.0 }
  0xee   :  { %v264_v30 = vpack.c.bf16 %v250_v27, %v249_v26 }
  0xef   :  { %v263_v31 = vpack.c.bf16 %v248_v29, %v247_v28  ;;  %v638_v32 = vpop.f32.mrb[4].mxu1 }
  0xf0   :  { %v209_v33 = vadd.f32 %v638_v32, %v555_v17  ;;  %v200_v34 = vpop.f32.mrb[5].mxu1 }
  0xf1   :  { %v201_v35 = vadd.f32 %v555_v17, %v200_v34  ;;  %656 = vmatprep.mubr.msk.bf16.mxu1 %vm125_vm0, %v263_v31  ;;  %v639_v36 = vpop.f32.mrb[6].mxu1 }
  0xf2   :  { %v253_v37 = vmax.f32 %v209_v33, 0.0  ;;  %v212_v38 = vadd.f32 %v639_v36, %v555_v17  ;;  %657 = vmatmul.mubr.msk.bf16.vlgmr.msra.gmra.mrb[16].mxu1 %vm125_vm0, %v264_v30  ;;  %v203_v39 = vpop.f32.mrb[7].mxu1 }
  0xf3   :  { %v251_v40 = vmax.f32 %v201_v35, 0.0  ;;  %v204_v41 = vadd.f32 %v555_v17, %v203_v39 }
  0xf4   :  { %v254_v42 = vmax.f32 %v212_v38, 0.0 }
  0xf5   :  { %v252_v43 = vmax.f32 %v204_v41, 0.0 }
  0xf6   :  { %v266_v44 = vpack.c.bf16 %v254_v42, %v253_v37 }
  0xf7   :  { %v265_v45 = vpack.c.bf16 %v252_v43, %v251_v40  ;;  %v642_v46 = vpop.f32.mrb[8].mxu1 }
  0xf8   :  { %v225_v47 = vadd.f32 %v642_v46, %v555_v17  ;;  %v216_v48 = vpop.f32.mrb[9].mxu1 }
  0xf9   :  { %660 = vmatprep.mubr.msk.bf16.mxu1 %vm125_vm0, %v265_v45  ;;  %v217_v49 = vadd.f32 %v555_v17, %v216_v48  ;;  %v643_v50 = vpop.f32.mrb[10].mxu1 }
  0xfa   :  { %661 = vmatmul.mubr.msk.bf16.gmra.mrb[20].mxu1 %vm125_vm0, %v266_v44  ;;  %v257_v51 = vmax.f32 %v225_v47, 0.0  ;;  %v228_v52 = vadd.f32 %v643_v50, %v555_v17  ;;  %v219_v53 = vpop.f32.mrb[11].mxu1 }
  0xfb   :  { %v255_v54 = vmax.f32 %v217_v49, 0.0  ;;  %v220_v55 = vadd.f32 %v555_v17, %v219_v53 }
  0xfc   :  { %v258_v56 = vmax.f32 %v228_v52, 0.0 }
  0xfd   :  { %v256_v57 = vmax.f32 %v220_v55, 0.0 }
  0xfe   :  { %v268_v58 = vpack.c.bf16 %v258_v56, %v257_v51 }
  0xff   :  { %v267_v59 = vpack.c.bf16 %v256_v57, %v255_v54  ;;  %v646_v60 = vpop.f32.mrb[12].mxu1 }
 0x100   :  { %v241_v61 = vadd.f32 %v646_v60, %v555_v17  ;;  %v232_v62 = vpop.f32.mrb[13].mxu1 }
 0x101   :  { %664 = vmatprep.mubr.msk.bf16.mxu1 %vm125_vm0, %v267_v59  ;;  %v233_v63 = vadd.f32 %v555_v17, %v232_v62  ;;  %v647_v0 = vpop.f32.mrb[14].mxu1 }
 0x102   :  { %665 = vmatmul.mubr.msk.bf16.gmra.mrb[24].mxu1 %vm125_vm0, %v268_v58  ;;  %v261_v1 = vmax.f32 %v241_v61, 0.0  ;;  %v244_v2 = vadd.f32 %v647_v0, %v555_v17  ;;  %v235_v3 = vpop.f32.mrb[15].mxu1 }
 0x103   :  { %v259_v4 = vmax.f32 %v233_v63, 0.0  ;;  %v236_v5 = vadd.f32 %v555_v17, %v235_v3 }
 0x104   :  { %v262_v6 = vmax.f32 %v244_v2, 0.0 }
 0x105   :  { %v260_v7 = vmax.f32 %v236_v5, 0.0 }
 0x106   :  { %v270_v8 = vpack.c.bf16 %v262_v6, %v261_v1 }
 0x107   :  { %v269_v9 = vpack.c.bf16 %v260_v7, %v259_v4 }
 0x109   :  { %668 = vmatprep.mubr.msk.bf16.mxu1 %vm125_vm0, %v269_v9 }
 0x10a   :  { %669 = vmatmul.mubr.msk.bf16.gmra.mrb[28].mxu1 %vm125_vm0, %v270_v8 }
 0x1c5   :  { %v658_v14 = vpop.f32.mrb[16].mxu1 }
 0x1c6   :  { %v377_v15 = vadd.f32 %v658_v14, %v576_v13  ;;  %v368_v16 = vpop.f32.mrb[17].mxu1 }
 0x1c7   :  { %v369_v17 = vadd.f32 %v576_v13, %v368_v16  ;;  %v659_v18 = vpop.f32.mrb[18].mxu1  ;;  %v462_v16 = vlaneseq }
 0x1c8   :  { %v380_v19 = vadd.f32 %v659_v18, %v576_v13  ;;  %v371_v20 = vpop.f32.mrb[19].mxu1  ;;  %v433_v22 = vmax.f32 %v377_v15, 0.0  ;;  %v455_v15 = vld [vmem:[%s896_s5] sm:$0x1]  ;;  %s717_s5 = scalar_lea.vmem %s548_s12, 16 }
 0x1c9   :  { %v372_v21 = vadd.f32 %v576_v13, %v371_v20  ;;  %v431_v24 = vmax.f32 %v369_v17, 0.0  ;;  %v463_v17 = vshrl.u32 %v462_v16, 7  ;;  %p718_p0 = scmp.ne.s32.totalorder %s548_s12, %s717_s5  ;;  %p723_p2 = scmp.lt.s32.totalorder %s721_s13, %s717_s5 }
 0x1ca   :  { %v434_v23 = vmax.f32 %v380_v19, 0.0  ;;  %v460_v19 = vpop.permute.xlu0 %459 }
 0x1cb   :  { %v432_v25 = vmax.f32 %v372_v21, 0.0  ;;  %v464_v18 = vsub.s32 0, %v463_v17  ;;  %p724_p3 = por %p723_p2, %p722_p1 }
 0x1cc   :  { %v448_v26 = vpack.c.bf16 %v434_v23, %v433_v22 }
 0x1cd   :  { %v662_v27 = vpop.f32.mrb[20].mxu1  ;;  %v447_v28 = vpack.c.bf16 %v432_v25, %v431_v24  ;;  %v465_v20 = vrot.slane %v460_v19, %v464_v18  ;;  %p725_p4 = pnand %p724_p3, %p718_p0 }
 0x1ce   :  { %v393_v29 = vadd.f32 %v662_v27, %v576_v13  ;;  %v384_v30 = vpop.f32.mrb[21].mxu1  ;;  %v474_v46 = vsel %vm466_vm2, %v448_v26, 0 }
 0x1cf   :  { %v385_v31 = vadd.f32 %v576_v13, %v384_v30  ;;  %v663_v32 = vpop.f32.mrb[22].mxu1  ;;  %v471_v33 = vsel %vm466_vm2, %v447_v28, 0 }
 0x1d0   :  { %v437_v34 = vmax.f32 %v393_v29, 0.0  ;;  %v396_v35 = vadd.f32 %v663_v32, %v576_v13  ;;  %673 = vmatpush3.bf16.xpose.msra.mxu0 %v471_v33  ;;  %v387_v36 = vpop.f32.mrb[23].mxu1 }
 0x1d1   :  { %v435_v37 = vmax.f32 %v385_v31, 0.0  ;;  %v388_v38 = vadd.f32 %v576_v13, %v387_v36  ;;  %674 = vmatprep.subr.bf16.mxu0 %v741_v10 }
 0x1d2   :  { %v438_v39 = vmax.f32 %v396_v35, 0.0 }
 0x1d3   :  { %v436_v40 = vmax.f32 %v388_v38, 0.0 }
 0x1d4   :  { %v450_v41 = vpack.c.bf16 %v438_v39, %v437_v34 }
 0x1d5   :  { %v449_v42 = vpack.c.bf16 %v436_v40, %v435_v37  ;;  %v666_v43 = vpop.f32.mrb[24].mxu1 }
 0x1d6   :  { %v409_v44 = vadd.f32 %v666_v43, %v576_v13  ;;  %v400_v45 = vpop.f32.mrb[25].mxu1  ;;  %v480_v9 = vsel %vm466_vm2, %v450_v41, 0 }
 0x1d7   :  { %v401_v47 = vadd.f32 %v576_v13, %v400_v45  ;;  %v667_v48 = vpop.f32.mrb[26].mxu1  ;;  %v477_v61 = vsel %vm466_vm2, %v449_v42, 0 }
 0x1d8   :  { %675 = vmatpush3.bf16.xpose.msra.mxu0 %v474_v46  ;;  %v441_v49 = vmax.f32 %v409_v44, 0.0  ;;  %v412_v50 = vadd.f32 %v667_v48, %v576_v13  ;;  %v403_v51 = vpop.f32.mrb[27].mxu1 }
 0x1d9   :  { %v439_v52 = vmax.f32 %v401_v47, 0.0  ;;  %676 = vmatprep.subr.bf16.mxu0 %v741_v10  ;;  %v404_v53 = vadd.f32 %v576_v13, %v403_v51 }
 0x1da   :  { %v442_v54 = vmax.f32 %v412_v50, 0.0 }
 0x1db   :  { %v440_v55 = vmax.f32 %v404_v53, 0.0 }
 0x1dc   :  { %v452_v56 = vpack.c.bf16 %v442_v54, %v441_v49 }
 0x1dd   :  { %v451_v57 = vpack.c.bf16 %v440_v55, %v439_v52  ;;  %v670_v58 = vpop.f32.mrb[28].mxu1 }
 0x1de   :  { %v425_v59 = vadd.f32 %v670_v58, %v576_v13  ;;  %v416_v60 = vpop.f32.mrb[29].mxu1  ;;  %v486_v12 = vsel %vm466_vm2, %v452_v56, 0 }
 0x1df   :  { %v417_v62 = vadd.f32 %v576_v13, %v416_v60  ;;  %v671_v63 = vpop.f32.mrb[30].mxu1  ;;  %v483_v11 = vsel %vm466_vm2, %v451_v57, 0 }
 0x1e0   :  { %677 = vmatpush3.bf16.xpose.msra.mxu0 %v477_v61  ;;  %v445_v0 = vmax.f32 %v425_v59, 0.0  ;;  %v428_v1 = vadd.f32 %v671_v63, %v576_v13  ;;  %v419_v2 = vpop.f32.mrb[31].mxu1 }
 0x1e1   :  { %678 = vmatprep.subr.bf16.mxu0 %v741_v10  ;;  %v443_v3 = vmax.f32 %v417_v62, 0.0  ;;  %v420_v4 = vadd.f32 %v576_v13, %v419_v2 }
 0x1e2   :  { %v446_v5 = vmax.f32 %v428_v1, 0.0 }
 0x1e3   :  { %v444_v6 = vmax.f32 %v420_v4, 0.0 }
 0x1e4   :  { %v454_v7 = vpack.c.bf16 %v446_v5, %v445_v0 }
 0x1e5   :  { %v453_v8 = vpack.c.bf16 %v444_v6, %v443_v3 }
 0x1e6   :  { %v492_v14 = vsel %vm466_vm2, %v454_v7, 0 }
 0x1e7   :  { %v489_v13 = vsel %vm466_vm2, %v453_v8, 0 }
 0x1e8   :  { %679 = vmatpush3.bf16.xpose.msra.mxu0 %v480_v9 }
 0x1e9   :  { %680 = vmatprep.subr.bf16.mxu0 %v741_v10 }
 0x1f0   :  { %681 = vmatpush3.bf16.xpose.msra.mxu0 %v483_v11 }
 0x1f1   :  { %682 = vmatprep.subr.bf16.mxu0 %v741_v10 }
 0x1f8   :  { %683 = vmatpush3.bf16.xpose.msra.mxu0 %v486_v12 }
 0x1f9   :  { %684 = vmatprep.subr.bf16.mxu0 %v741_v10 }
 0x200   :  { %685 = vmatpush3.bf16.xpose.msra.mxu0 %v489_v13 }
 0x201   :  { %686 = vmatprep.subr.bf16.mxu0 %v741_v10 }
 0x208   :  { %687 = vmatpush3.bf16.xpose.msra.mxu0 %v492_v14 }
 0x20f   :  { %689 = vmatmul.mubr.msk.bf16.vlgmr.msra.gmra.mrb[0].mxu0 %vm466_vm2, %v455_v15 }
 0x2e2   :  { %v528_v21 = vpop.f32.mrb[0].mxu0 }
 0x2e3   :  { %v529_v22 = vadd.f32 %v528_v21, %v465_v20  ;;  %v690_v23 = vpop.f32.mrb[1].mxu0 }
 0x2e4   :  { %v531_v24 = vpop.f32.mrb[2].mxu0 }
 0x2e5   :  { %v590_v25 = vmul.f32 -1.442695, %v529_v22  ;;  %v691_v10 = vpop.f32.mrb[3].mxu0 }
 0x2e7   :  { %713 = vpow2.f32 %v590_v25 }
 0x2f1   :  { %v714_v26 = vpop.eup %713 }
 0x2f2   :  { %v537_v27 = vadd.f32 1.0, %v714_v26 }
 0x2f4   :  { %715 = vrcp.f32 %v537_v27 }
 0x2fe   :  { %v716_v28 = vpop.eup %715 }
 0x2ff   :  { %540 = vst [vmem:[#allocation3] sm:$0x1] %v716_v28 }
 0x300   :  { %728 = shalt.err (!%p725_p4)
}
 0x301   :  { %s729_s16 = scalar_lea.hbm %s898_s7, 16 }
 0x302   :  { %p730_p5 = scmp.ne.s32.totalorder %s898_s7, %s729_s16  ;;  %p733_p6 = scmp.lt.u32.totalorder %s729_s16, %s898_s7 }
 0x304   :  { %p735_p7 = pnand %p733_p6, %p730_p5 }
 0x306   :  { %738 = shalt.err (!%p735_p7)
}
 0x307   :  { %550 = dma.vmem_to_hbm [thread:$0]  %s548_s12, 16, %s898_s7, [#allocation4]  }
 0x308   :  { %739 = dma.done.wait [#allocation4], 16  }
 0x309   :  { %740 = vsyncadd [#allocation4], 4294967280 }
 0x30a   :  { %554 = vsyncpa [#allocation4], 1 }

</bundles_post_ra>
